<compile_context>
chip_gen: v6e
topology: v6e:2x2x1
jax: 0.10.0
libtpu: 0.0.40
codegen_flags: <defaults>
</compile_context>

<pallas_src>
import math

import jax
import jax.numpy as jnp
from jax.experimental import pallas as pl
from jax.experimental.pallas import tpu as pltpu

Y_DIM = 3
N_HIDDEN = 512
IN_PAD = 8            # x / w1 padded 3 -> 8 (sublane-aligned), padding is zero
OUT_PAD = 8           # output features padded 3 -> 8, padding is zero
MAX_BATCH_TILE = 512  # batch tile for the parallel grid axis

_SQRT_2_OVER_PI = 0.7978845608028654
_GELU_C = 0.044715


def _round_up(n, m):
    return (n + m - 1) // m * m


def _gelu_tanh(x):
    # tanh-approximate GELU: tanh -> EUP slot (effectively free), ~6 VALU ops.
    # |gelu_tanh - gelu_erf| < ~3e-3, inside the bf16 quantization budget.
    return 0.5 * x * (1.0 + jnp.tanh(_SQRT_2_OVER_PI * (x + _GELU_C * x * x * x)))


def _ode_mlp_kernel(x_ref, w1_ref, b1_ref, w2_ref, b2_ref, w3t_ref, b3_ref, o_ref):
    # layer 1: tiny K=8 bf16 MXU dot (MXU is otherwise idle here); bias+GELU in f32
    h = jnp.dot(x_ref[...], w1_ref[...],
                preferred_element_type=jnp.float32) + b1_ref[...]     # (bt, 512) f32
    h = _gelu_tanh(h)

    # layer 2: bf16 MXU matmul, f32 accumulation
    h = jnp.dot(h.astype(jnp.bfloat16), w2_ref[...],
                preferred_element_type=jnp.float32) + b2_ref[...]     # (bt, 512) f32
    h = _gelu_tanh(h)

    # output layer: contract over N_HIDDEN with transposed-B semantics (no materialized
    # transpose); result is lane-dense (OUT_PAD, bt) so stores are unmasked and aligned.
    o = jax.lax.dot_general(
        w3t_ref[...], h.astype(jnp.bfloat16),
        dimension_numbers=(((1,), (1,)), ((), ())),
        preferred_element_type=jnp.float32)                           # (OUT_PAD, bt) f32
    o_ref[...] = o + b3_ref[...]


def prepare_params(params):
    """One-time packing of the PyTorch-style params for the kernel.

    Pads the tiny y_dim dimensions with zeros (contribute exactly 0), transposes w3,
    and casts weights to bf16. Call once, reuse for every forward.
    """
    w1, b1, w2, b2, w3, b3 = params
    w1p = jnp.zeros((IN_PAD, N_HIDDEN), jnp.bfloat16).at[:Y_DIM, :].set(
        w1.astype(jnp.bfloat16))
    b1p = b1.reshape(1, N_HIDDEN).astype(jnp.float32)
    w2p = w2.astype(jnp.bfloat16)
    b2p = b2.reshape(1, N_HIDDEN).astype(jnp.float32)
    w3t = jnp.zeros((OUT_PAD, N_HIDDEN), jnp.bfloat16).at[:Y_DIM, :].set(
        w3.T.astype(jnp.bfloat16))
    b3p = jnp.zeros((OUT_PAD, 1), jnp.float32).at[:Y_DIM, 0].set(
        b3.astype(jnp.float32))
    return (w1p, b1p, w2p, b2p, w3t, b3p)


def _choose_tiling(batch):
    """Pick (batch_tile, padded_batch).

    - small batch: one tile (block dims equal the full array -> layout rules satisfied)
    - large batch: >= 2 balanced tiles (v7x megacore split), bt a multiple of 128 so the
      lane-dense (OUT_PAD, bt) output blocks are fully (8,128)-aligned.
    """
    if batch <= MAX_BATCH_TILE:
        bt = max(8, _round_up(batch, 8))
        return bt, bt
    n_tiles = -(-batch // MAX_BATCH_TILE)            # ceil, >= 2
    bt = _round_up(-(-batch // n_tiles), 128)
    return bt, bt * n_tiles


@jax.jit
def ode_mlp_forward(t, y, prepared):
    """Equivalent of ODE_MLP.forward(t, y); `t` is ignored (as in the PyTorch module)."""
    del t
    w1p, b1p, w2p, b2p, w3t, b3p = prepared
    batch = y.shape[0]
    bt, padded_batch = _choose_tiling(batch)

    # pad + cast the state once in the wrapper: (padded_batch, 8) bf16, zero padding
    x = jnp.zeros((padded_batch, IN_PAD), jnp.bfloat16).at[:batch, :Y_DIM].set(
        y.astype(jnp.bfloat16))

    const = lambda i: (0, 0)  # same weight block every grid step -> DMA'd once, resident

    out_pad = pl.pallas_call(
        _ode_mlp_kernel,
        out_shape=jax.ShapeDtypeStruct((OUT_PAD, padded_batch), jnp.float32),
        grid_spec=pltpu.PrefetchScalarGridSpec(
            num_scalar_prefetch=0,
            grid=(padded_batch // bt,),
            in_specs=[
                pl.BlockSpec((bt, IN_PAD), lambda i: (i, 0)),    # x (bf16, zero-padded)
                pl.BlockSpec((IN_PAD, N_HIDDEN), const),         # w1 (rows padded 3->8)
                pl.BlockSpec((1, N_HIDDEN), const),              # b1
                pl.BlockSpec((N_HIDDEN, N_HIDDEN), const),       # w2
                pl.BlockSpec((1, N_HIDDEN), const),              # b2
                pl.BlockSpec((OUT_PAD, N_HIDDEN), const),        # w3^T (rows padded 3->8)
                pl.BlockSpec((OUT_PAD, 1), const),               # b3 (column vector)
            ],
            out_specs=pl.BlockSpec((OUT_PAD, bt), lambda i: (0, i)),  # lane-dense output
        ),
        compiler_params=pltpu.CompilerParams(
            dimension_semantics=("parallel",)),
    )(x, w1p, b1p, w2p, b2p, w3t, b3p)

    return out_pad[:Y_DIM, :batch].T                 # (batch, 3) f32


def init_params(key):
    """Deterministic init mimicking PyTorch nn.Linear default: U(-1/sqrt(fan_in), +1/sqrt(fan_in))."""
    ks = jax.random.split(key, 6)

    def lin(kw, kb, fan_in, fan_out):
        bound = 1.0 / math.sqrt(fan_in)
        w = jax.random.uniform(kw, (fan_in, fan_out), jnp.float32, -bound, bound)
        b = jax.random.uniform(kb, (fan_out,), jnp.float32, -bound, bound)
        return w, b

    w1, b1 = lin(ks[0], ks[1], Y_DIM, N_HIDDEN)
    w2, b2 = lin(ks[2], ks[3], N_HIDDEN, N_HIDDEN)
    w3, b3 = lin(ks[4], ks[5], N_HIDDEN, Y_DIM)
    return (w1, b1, w2, b2, w3, b3)


def _reference_forward_f32(y, params):
    """Pure-f32 reference with the original module semantics (exact-erf GELU)."""
    w1, b1, w2, b2, w3, b3 = params
    h = jax.nn.gelu(y @ w1 + b1, approximate=False)
    h = jax.nn.gelu(h @ w2 + b2, approximate=False)
    return h @ w3 + b3


def _reference_forward_mixed(y, prepared):
    """Reference emulating the kernel exactly: bf16 weights/inputs, f32 accumulate, tanh-GELU."""
    w1p, b1p, w2p, b2p, w3t, b3p = prepared
    batch = y.shape[0]
    x8 = jnp.zeros((batch, IN_PAD), jnp.bfloat16).at[:, :Y_DIM].set(
        y.astype(jnp.bfloat16))
    h = jnp.dot(x8, w1p, preferred_element_type=jnp.float32) + b1p
    h = _gelu_tanh(h)
    h = jnp.dot(h.astype(jnp.bfloat16), w2p, preferred_element_type=jnp.float32) + b2p
    h = _gelu_tanh(h)
    o = jax.lax.dot_general(w3t, h.astype(jnp.bfloat16),
                            dimension_numbers=(((1,), (1,)), ((), ())),
                            preferred_element_type=jnp.float32) + b3p
    return o[:Y_DIM, :].T


def _check(y, params, prepared):
    t = jnp.float32(0.0)                             # unused, as in the PyTorch module
    out = jax.block_until_ready(ode_mlp_forward(t, y, prepared))
    assert out.shape == (y.shape[0], Y_DIM)

    # tight check vs. a reference emulating the kernel's mixed precision exactly
    ref_mixed = _reference_forward_mixed(y, prepared)
    assert jnp.allclose(out, ref_mixed, atol=2e-3, rtol=2e-3), \
        "mismatch vs mixed-precision reference"

    # loose check vs. the original pure-f32 / exact-erf module semantics
    ref_f32 = _reference_forward_f32(y, params)
    assert jnp.allclose(out, ref_f32, atol=3e-2, rtol=3e-2), \
        "mismatch vs f32 reference"
    return out


if __name__ == "__main__":
    key = jax.random.PRNGKey(0)
    kp, ky1, ky2 = jax.random.split(key, 3)
    params = init_params(kp)
    prepared = prepare_params(params)                # one-time packing (not per call)
    prepared = jax.tree_util.tree_map(jax.block_until_ready, prepared)

    # small-batch single-tile path (primary test)
    y_small = jax.random.normal(ky1, (8, Y_DIM), jnp.float32)   # Lorenz state batch
    _check(y_small, params, prepared)

    # multi-tile path (2 balanced tiles on the parallel axis, lane-dense output blocks)
    y_big = jax.random.normal(ky2, (520, Y_DIM), jnp.float32)
    _check(y_big, params, prepared)

    print("KERNEL_OK")
</pallas_src>

<mosaic_0001>
module attributes {stable_mosaic.version = 11 : i64} {
  func.func @_ode_mlp_kernel(%arg0: i32, %arg1: memref<8x8xbf16, #tpu.memory_space<vmem>>, %arg2: memref<8x512xbf16, #tpu.memory_space<vmem>>, %arg3: memref<1x512xf32, #tpu.memory_space<vmem>>, %arg4: memref<512x512xbf16, #tpu.memory_space<vmem>>, %arg5: memref<1x512xf32, #tpu.memory_space<vmem>>, %arg6: memref<8x512xbf16, #tpu.memory_space<vmem>>, %arg7: memref<8x1xf32, #tpu.memory_space<vmem>>, %arg8: memref<8x8xf32, #tpu.memory_space<vmem>>) attributes {dimension_semantics = [#tpu.dimension_semantics<parallel>], iteration_bounds = array<i64: 1>, scalar_prefetch = 0 : i64, scratch_operands = 0 : i64, tpu.core_type = #tpu.core_type<tc>, window_params = [{transform_indices = @transform_0, window_bounds = array<i64: 8, 8>}, {pipeline_mode = #tpu.pipeline_mode<synchronous>, transform_indices = @transform_1, window_bounds = array<i64: 8, 512>}, {pipeline_mode = #tpu.pipeline_mode<synchronous>, transform_indices = @transform_2, window_bounds = array<i64: 1, 512>}, {pipeline_mode = #tpu.pipeline_mode<synchronous>, transform_indices = @transform_3, window_bounds = array<i64: 512, 512>}, {pipeline_mode = #tpu.pipeline_mode<synchronous>, transform_indices = @transform_4, window_bounds = array<i64: 1, 512>}, {pipeline_mode = #tpu.pipeline_mode<synchronous>, transform_indices = @transform_5, window_bounds = array<i64: 8, 512>}, {pipeline_mode = #tpu.pipeline_mode<synchronous>, transform_indices = @transform_6, window_bounds = array<i64: 8, 1>}, {transform_indices = @transform_7, window_bounds = array<i64: 8, 8>}]} {
    %c0 = arith.constant 0 : index
    %c0_0 = arith.constant 0 : index
    %0 = vector.load %arg1[%c0, %c0_0] : memref<8x8xbf16, #tpu.memory_space<vmem>>, vector<8x8xbf16>
    %c0_1 = arith.constant 0 : index
    %c0_2 = arith.constant 0 : index
    %1 = vector.load %arg2[%c0_1, %c0_2] : memref<8x512xbf16, #tpu.memory_space<vmem>>, vector<8x512xbf16>
    %cst = arith.constant dense<0.000000e+00> : vector<8x512xf32>
    %2 = tpu.matmul %0, %1, %cst {dimension_numbers = #tpu.dot_dimension_numbers<[1], [0], [0], [1], [0, 0, 1, 1], [], []>} : vector<8x8xbf16>, vector<8x512xbf16>, vector<8x512xf32> -> vector<8x512xf32>
    %c0_3 = arith.constant 0 : index
    %c0_4 = arith.constant 0 : index
    %3 = vector.load %arg3[%c0_3, %c0_4] : memref<1x512xf32, #tpu.memory_space<vmem>>, vector<1x512xf32>
    %4 = vector.broadcast %3 : vector<1x512xf32> to vector<8x512xf32>
    %5 = arith.addf %2, %4 : vector<8x512xf32>
    %cst_5 = arith.constant 5.000000e-01 : f32
    %6 = vector.broadcast %cst_5 : f32 to vector<8x512xf32>
    %7 = arith.mulf %6, %5 : vector<8x512xf32>
    %cst_6 = arith.constant 4.471500e-02 : f32
    %8 = vector.broadcast %cst_6 : f32 to vector<8x512xf32>
    %9 = arith.mulf %8, %5 : vector<8x512xf32>
    %10 = arith.mulf %9, %5 : vector<8x512xf32>
    %11 = arith.mulf %10, %5 : vector<8x512xf32>
    %12 = arith.addf %5, %11 : vector<8x512xf32>
    %cst_7 = arith.constant 0.797884583 : f32
    %13 = vector.broadcast %cst_7 : f32 to vector<8x512xf32>
    %14 = arith.mulf %13, %12 : vector<8x512xf32>
    %15 = math.tanh %14 : vector<8x512xf32>
    %cst_8 = arith.constant 1.000000e+00 : f32
    %16 = vector.broadcast %cst_8 : f32 to vector<8x512xf32>
    %17 = arith.addf %16, %15 : vector<8x512xf32>
    %18 = arith.mulf %7, %17 : vector<8x512xf32>
    %19 = arith.truncf %18 : vector<8x512xf32> to vector<8x512xbf16>
    %c0_9 = arith.constant 0 : index
    %c0_10 = arith.constant 0 : index
    %20 = vector.load %arg4[%c0_9, %c0_10] : memref<512x512xbf16, #tpu.memory_space<vmem>>, vector<512x512xbf16>
    %cst_11 = arith.constant dense<0.000000e+00> : vector<8x512xf32>
    %21 = tpu.matmul %19, %20, %cst_11 {dimension_numbers = #tpu.dot_dimension_numbers<[1], [0], [0], [1], [0, 0, 1, 1], [], []>} : vector<8x512xbf16>, vector<512x512xbf16>, vector<8x512xf32> -> vector<8x512xf32>
    %c0_12 = arith.constant 0 : index
    %c0_13 = arith.constant 0 : index
    %22 = vector.load %arg5[%c0_12, %c0_13] : memref<1x512xf32, #tpu.memory_space<vmem>>, vector<1x512xf32>
    %23 = vector.broadcast %22 : vector<1x512xf32> to vector<8x512xf32>
    %24 = arith.addf %21, %23 : vector<8x512xf32>
    %cst_14 = arith.constant 5.000000e-01 : f32
    %25 = vector.broadcast %cst_14 : f32 to vector<8x512xf32>
    %26 = arith.mulf %25, %24 : vector<8x512xf32>
    %cst_15 = arith.constant 4.471500e-02 : f32
    %27 = vector.broadcast %cst_15 : f32 to vector<8x512xf32>
    %28 = arith.mulf %27, %24 : vector<8x512xf32>
    %29 = arith.mulf %28, %24 : vector<8x512xf32>
    %30 = arith.mulf %29, %24 : vector<8x512xf32>
    %31 = arith.addf %24, %30 : vector<8x512xf32>
    %cst_16 = arith.constant 0.797884583 : f32
    %32 = vector.broadcast %cst_16 : f32 to vector<8x512xf32>
    %33 = arith.mulf %32, %31 : vector<8x512xf32>
    %34 = math.tanh %33 : vector<8x512xf32>
    %cst_17 = arith.constant 1.000000e+00 : f32
    %35 = vector.broadcast %cst_17 : f32 to vector<8x512xf32>
    %36 = arith.addf %35, %34 : vector<8x512xf32>
    %37 = arith.mulf %26, %36 : vector<8x512xf32>
    %c0_18 = arith.constant 0 : index
    %c0_19 = arith.constant 0 : index
    %38 = vector.load %arg6[%c0_18, %c0_19] : memref<8x512xbf16, #tpu.memory_space<vmem>>, vector<8x512xbf16>
    %39 = arith.truncf %37 : vector<8x512xf32> to vector<8x512xbf16>
    %cst_20 = arith.constant dense<0.000000e+00> : vector<8x8xf32>
    %40 = tpu.matmul %38, %39, %cst_20 {dimension_numbers = #tpu.dot_dimension_numbers<[1], [1], [0], [0], [0, 0, 1, 0], [], []>} : vector<8x512xbf16>, vector<8x512xbf16>, vector<8x8xf32> -> vector<8x8xf32>
    %c0_21 = arith.constant 0 : index
    %c0_22 = arith.constant 0 : index
    %41 = vector.load %arg7[%c0_21, %c0_22] : memref<8x1xf32, #tpu.memory_space<vmem>>, vector<8x1xf32>
    %42 = vector.broadcast %41 : vector<8x1xf32> to vector<8x8xf32>
    %43 = arith.addf %40, %42 : vector<8x8xf32>
    %c0_23 = arith.constant 0 : index
    %c0_24 = arith.constant 0 : index
    %44 = vector.load %arg8[%c0_23, %c0_24] : memref<8x8xf32, #tpu.memory_space<vmem>>, vector<8x8xf32>
    tpu.vector_store %arg8[%c0_23, %c0_24], %43 {strides = array<i32>} : memref<8x8xf32, #tpu.memory_space<vmem>>, vector<8x8xf32>,
    return
  }
  func.func @transform_0(%arg0: i32) -> (i32, i32) {
    %c0_i32 = arith.constant 0 : i32
    %c0_i32_0 = arith.constant 0 : i32
    return %arg0, %c0_i32 : i32, i32
  }
  func.func @transform_1(%arg0: i32) -> (i32, i32) {
    %c0_i32 = arith.constant 0 : i32
    %c0_i32_0 = arith.constant 0 : i32
    %c0_i32_1 = arith.constant 0 : i32
    return %c0_i32, %c0_i32_0 : i32, i32
  }
  func.func @transform_2(%arg0: i32) -> (i32, i32) {
    %c0_i32 = arith.constant 0 : i32
    %c0_i32_0 = arith.constant 0 : i32
    %c0_i32_1 = arith.constant 0 : i32
    return %c0_i32, %c0_i32_0 : i32, i32
  }
  func.func @transform_3(%arg0: i32) -> (i32, i32) {
    %c0_i32 = arith.constant 0 : i32
    %c0_i32_0 = arith.constant 0 : i32
    %c0_i32_1 = arith.constant 0 : i32
    return %c0_i32, %c0_i32_0 : i32, i32
  }
  func.func @transform_4(%arg0: i32) -> (i32, i32) {
    %c0_i32 = arith.constant 0 : i32
    %c0_i32_0 = arith.constant 0 : i32
    %c0_i32_1 = arith.constant 0 : i32
    return %c0_i32, %c0_i32_0 : i32, i32
  }
  func.func @transform_5(%arg0: i32) -> (i32, i32) {
    %c0_i32 = arith.constant 0 : i32
    %c0_i32_0 = arith.constant 0 : i32
    %c0_i32_1 = arith.constant 0 : i32
    return %c0_i32, %c0_i32_0 : i32, i32
  }
  func.func @transform_6(%arg0: i32) -> (i32, i32) {
    %c0_i32 = arith.constant 0 : i32
    %c0_i32_0 = arith.constant 0 : i32
    %c0_i32_1 = arith.constant 0 : i32
    return %c0_i32, %c0_i32_0 : i32, i32
  }
  func.func @transform_7(%arg0: i32) -> (i32, i32) {
    %c0_i32 = arith.constant 0 : i32
    %c0_i32_0 = arith.constant 0 : i32
    return %c0_i32, %arg0 : i32, i32
  }
}

</mosaic_0001>

<bundles_post_ra>
// kernel: ode_mlp_forward.1
= control target key start
LH: loop header
LB: loop body
LE: loop exit
PB: predicated region body
PF: predicated region fallthrough
CT: control target
= control target key end

     0   :  { %12 = vsyncpa [#allocation3], 0  ;;  %s1700_s24 = smov [#allocation2]   ;;  %s1813_s0 = inlined_call_operand.vmem [shape: bf16[8,8], index: 0, kind: input, shape index: {}]   ;;  %s1814_s1 = inlined_call_operand.vmem [shape: bf16[8,512], index: 1, kind: input, shape index: {}]   ;;  %s1815_s2 = inlined_call_operand.vmem [shape: f32[1,512], index: 2, kind: input, shape index: {}]   ;;  %s1816_s3 = inlined_call_operand.hbm [shape: bf16[512,512], index: 3, kind: input, shape index: {}]   ;;  %s1817_s4 = inlined_call_operand.vmem [shape: f32[1,512], index: 4, kind: input, shape index: {}]   ;;  %s1818_s5 = inlined_call_operand.vmem [shape: bf16[8,512], index: 5, kind: input, shape index: {}]   ;;  %s1819_s6 = inlined_call_operand.vmem [shape: f32[8,1], index: 6, kind: input, shape index: {}]   ;;  %s1820_s7 = inlined_call_operand.vmem [shape: f32[8,8], index: 7, kind: output, shape index: {}]  }
   0x1   :  { %s24_s25 = sshll.u32 %s1700_s24, 4  ;;  %s25_s25 = int_to_ptr.vmem [resolvable:$true] %s24_s25 }
   0x2   :  { %s1686_s26 = scalar_lea.vmem %s25_s25, 16384  ;;  %p1691_p1 = scmp.lt.s32.totalorder %s25_s25, %s25_s25 }
   0x3   :  { %p1687_p0 = scmp.ne.s32.totalorder %s25_s25, %s1686_s26  ;;  %p1692_p2 = scmp.lt.s32.totalorder %s1686_s26, %s1686_s26 }
   0x5   :  { %p1693_p3 = por %p1692_p2, %p1691_p1 }
   0x7   :  { %p1694_p4 = pnand %p1693_p3, %p1687_p0 }
   0x9   :  { %1697 = shalt.err (!%p1694_p4)
}
   0xa   :  { %s1701_s27 = smov 256   ;;  %s1702_s28 = smov 16  }
   0xb   :  { %30 = dma.hbm_to_vmem [thread:$0]  %s1816_s3, 16384, %s25_s25, [#allocation3], %s1701_s27, %s1701_s27, %s1702_s28  }
   0xc   :  { %1698 = dma.done.wait [#allocation3], 16384  }
   0xd   :  { %1699 = vsyncadd [#allocation3], 4294950912  ;;  %v1703_v0 = vmov 0   ;;  %v42_v1 = vld [vmem:[%s1814_s1] sm:$0xff]  ;;  %vm80_vm0 = vcmask 1043456   ;;  %v43_v2 = vld [vmem:[%s1814_s1 + $0x8] sm:$0xff] }
   0xe   :  { %125 = vmatprep.mubr.bf16.mxu0 %v1703_v0  ;;  %166 = vmatprep.mubr.bf16.mxu1 %v1703_v0  ;;  %v1318_v3 = vcombine.high %v42_v1, %v42_v1  ;;  %v1320_v4 = vcombine.high %v43_v2, %v43_v2  ;;  %v1317_v5 = vcombine.low %v42_v1, %v42_v1  ;;  %v41_v7 = vld [vmem:[%s1813_s0] sm:$0xf]  ;;  %v1468_v8 = vld [vmem:[#allocation2 + $0xe4] ss:$16 sps:$4 sm:$0xff]   ;;  %vm76_vm1 = vcmask 64512  }
   0xf   :  { %1461 = vset.pattern.permute.xlu0 %v1703_v0  ;;  %v1319_v6 = vcombine.low %v43_v2, %v43_v2  ;;  %v1466_v11 = vld [vmem:[#allocation2 + $0xe0] ss:$16 sps:$4 sm:$0xff]   ;;  %v1471_v12 = vld [vmem:[#allocation2 + $0x2e4] ss:$16 sps:$4 sm:$0xff]  }
  0x10   :  { %1321 = vmatprep.subr.msk.bf16.mxu0 %vm80_vm0, %v1318_v3  ;;  %1323 = vmatprep.subr.msk.bf16.mxu1 %vm80_vm0, %v1320_v4  ;;  %v82_v9 = vsel %vm80_vm0, %v1317_v5, 0  ;;  %v1469_v13 = vld [vmem:[#allocation2 + $0x2e0] ss:$16 sps:$4 sm:$0xff]   ;;  %v1474_v14 = vld [vmem:[#allocation2 + $0xc4] ss:$16 sps:$4 sm:$0xff]  }
  0x11   :  { %v88_v10 = vsel %vm80_vm0, %v1319_v6, 0  ;;  %108 = vmatpush1.bf16.msra.mxu0 %v82_v9  ;;  %v1477_v15 = vld [vmem:[#allocation2 + $0x2c4] ss:$16 sps:$4 sm:$0xff]   ;;  %v1472_v16 = vld [vmem:[#allocation2 + $0xc0] ss:$16 sps:$4 sm:$0xff]  }
  0x12   :  { %149 = vmatpush1.bf16.msra.mxu1 %v88_v10  ;;  %1005 = vmatprep.subr.bf16.mxu0 %v1468_v8  ;;  %v1475_v17 = vld [vmem:[#allocation2 + $0x2c0] ss:$16 sps:$4 sm:$0xff]   ;;  %v1480_v18 = vld [vmem:[#allocation2 + $0xa4] ss:$16 sps:$4 sm:$0xff]   ;;  %v1564_v10 = vld [vmem:[#allocation2 + $0xec] ss:$16 sps:$4 sm:$0xff]  }
  0x13   :  { %1046 = vmatprep.subr.bf16.mxu1 %v1471_v12  ;;  %v1483_v19 = vld [vmem:[#allocation2 + $0x2a4] ss:$16 sps:$4 sm:$0xff]   ;;  %v1478_v20 = vld [vmem:[#allocation2 + $0xa0] ss:$16 sps:$4 sm:$0xff]   ;;  %v46_v12 = vlaneseq }
  0x14   :  { %1322 = vmatmul.mubr.msk.bf16.vlgmr.msra.gmra.mxu0 %vm76_vm1, %v41_v7  ;;  %v1481_v21 = vld [vmem:[#allocation2 + $0x2a0] ss:$16 sps:$4 sm:$0xff]   ;;  %v1486_v22 = vld [vmem:[#allocation2 + $0x84] ss:$16 sps:$4 sm:$0xff]  }
  0x15   :  { %1324 = vmatmul.mubr.msk.bf16.vlgmr.msra.gmra.mxu1 %vm76_vm1, %v41_v7  ;;  %1006 = vmatpush1.bf16.msra.mxu0 %v1466_v11  ;;  %v1489_v23 = vld [vmem:[#allocation2 + $0x284] ss:$16 sps:$4 sm:$0xff]   ;;  %v1484_v24 = vld [vmem:[#allocation2 + $0x80] ss:$16 sps:$4 sm:$0xff]   ;;  %v1567_v11 = vld [vmem:[#allocation2 + $0x2ec] ss:$16 sps:$4 sm:$0xff]  }
  0x16   :  { %1047 = vmatpush1.bf16.msra.mxu1 %v1469_v13  ;;  %1007 = vmatprep.subr.bf16.mxu0 %v1474_v14  ;;  %v1487_v25 = vld [vmem:[#allocation2 + $0x280] ss:$16 sps:$4 sm:$0xff]   ;;  %v1492_v26 = vld [vmem:[#allocation2 + $0x64] ss:$16 sps:$4 sm:$0xff]   ;;  %v1758_v13 = vshrl.u32 %v46_v12, 7 }
  0x17   :  { %1048 = vmatprep.subr.bf16.mxu1 %v1477_v15  ;;  %v1495_v27 = vld [vmem:[#allocation2 + $0x264] ss:$16 sps:$4 sm:$0xff]   ;;  %v1490_v28 = vld [vmem:[#allocation2 + $0x60] ss:$16 sps:$4 sm:$0xff]  }
  0x18   :  { %v1493_v29 = vld [vmem:[#allocation2 + $0x260] ss:$16 sps:$4 sm:$0xff]   ;;  %v1498_v30 = vld [vmem:[#allocation2 + $0x44] ss:$16 sps:$4 sm:$0xff]   ;;  %v48_v14 = vsub.s32 0, %v1758_v13  ;;  %v56_v15 = vsub.s32 2, %v1758_v13 }
  0x19   :  { %1008 = vmatpush1.bf16.msra.mxu0 %v1472_v16  ;;  %v1501_v31 = vld [vmem:[#allocation2 + $0x244] ss:$16 sps:$4 sm:$0xff]   ;;  %v1496_v32 = vld [vmem:[#allocation2 + $0x40] ss:$16 sps:$4 sm:$0xff]  }
  0x1a   :  { %1049 = vmatpush1.bf16.msra.mxu1 %v1475_v17  ;;  %1009 = vmatprep.subr.bf16.mxu0 %v1480_v18  ;;  %v1499_v33 = vld [vmem:[#allocation2 + $0x240] ss:$16 sps:$4 sm:$0xff]   ;;  %v1504_v34 = vld [vmem:[#allocation2 + $0x24] ss:$16 sps:$4 sm:$0xff]   ;;  %v52_v17 = vsub.s32 1, %v1758_v13  ;;  %v60_v18 = vsub.s32 3, %v1758_v13 }
  0x1b   :  { %1050 = vmatprep.subr.bf16.mxu1 %v1483_v19  ;;  %v1507_v35 = vld [vmem:[#allocation2 + $0x224] ss:$16 sps:$4 sm:$0xff]   ;;  %v1502_v36 = vld [vmem:[#allocation2 + $0x20] ss:$16 sps:$4 sm:$0xff]  }
  0x1c   :  { %v1505_v37 = vld [vmem:[#allocation2 + $0x220] ss:$16 sps:$4 sm:$0xff]   ;;  %v1510_v38 = vld [vmem:[#allocation2 + $0x4] ss:$16 sps:$4 sm:$0xff]  }
  0x1d   :  { %1010 = vmatpush1.bf16.msra.mxu0 %v1478_v20  ;;  %v1513_v39 = vld [vmem:[#allocation2 + $0x204] ss:$16 sps:$4 sm:$0xff]   ;;  %v1508_v40 = vld [vmem:[#allocation2] ss:$16 sps:$4 sm:$0xff]  }
  0x1e   :  { %1051 = vmatpush1.bf16.msra.mxu1 %v1481_v21  ;;  %1011 = vmatprep.subr.bf16.mxu0 %v1486_v22  ;;  %v1511_v41 = vld [vmem:[#allocation2 + $0x200] ss:$16 sps:$4 sm:$0xff]   ;;  %v1516_v42 = vld [vmem:[#allocation2 + $0x1e4] ss:$16 sps:$4 sm:$0xff]  }
  0x1f   :  { %1052 = vmatprep.subr.bf16.mxu1 %v1489_v23  ;;  %v1519_v43 = vld [vmem:[#allocation2 + $0x3e4] ss:$16 sps:$4 sm:$0xff]   ;;  %v1514_v44 = vld [vmem:[#allocation2 + $0x1e0] ss:$16 sps:$4 sm:$0xff]  }
  0x20   :  { %v1517_v45 = vld [vmem:[#allocation2 + $0x3e0] ss:$16 sps:$4 sm:$0xff]   ;;  %v1522_v46 = vld [vmem:[#allocation2 + $0x1c4] ss:$16 sps:$4 sm:$0xff]  }
  0x21   :  { %1012 = vmatpush1.bf16.msra.mxu0 %v1484_v24  ;;  %v1525_v47 = vld [vmem:[#allocation2 + $0x3c4] ss:$16 sps:$4 sm:$0xff]   ;;  %v1520_v48 = vld [vmem:[#allocation2 + $0x1c0] ss:$16 sps:$4 sm:$0xff]  }
  0x22   :  { %1053 = vmatpush1.bf16.msra.mxu1 %v1487_v25  ;;  %1013 = vmatprep.subr.bf16.mxu0 %v1492_v26  ;;  %v1523_v49 = vld [vmem:[#allocation2 + $0x3c0] ss:$16 sps:$4 sm:$0xff]   ;;  %v1528_v50 = vld [vmem:[#allocation2 + $0x1a4] ss:$16 sps:$4 sm:$0xff]  }
  0x23   :  { %1054 = vmatprep.subr.bf16.mxu1 %v1495_v27  ;;  %v1531_v51 = vld [vmem:[#allocation2 + $0x3a4] ss:$16 sps:$4 sm:$0xff]   ;;  %v1526_v52 = vld [vmem:[#allocation2 + $0x1a0] ss:$16 sps:$4 sm:$0xff]  }
  0x24   :  { %v1529_v53 = vld [vmem:[#allocation2 + $0x3a0] ss:$16 sps:$4 sm:$0xff]   ;;  %v1534_v54 = vld [vmem:[#allocation2 + $0x184] ss:$16 sps:$4 sm:$0xff]  }
  0x25   :  { %1014 = vmatpush1.bf16.msra.mxu0 %v1490_v28  ;;  %v1532_v55 = vld [vmem:[#allocation2 + $0x180] ss:$16 sps:$4 sm:$0xff]   ;;  %v1537_v57 = vld [vmem:[#allocation2 + $0x384] ss:$16 sps:$4 sm:$0xff]  }
  0x26   :  { %1055 = vmatpush1.bf16.msra.mxu1 %v1493_v29  ;;  %1015 = vmatprep.subr.bf16.mxu0 %v1498_v30  ;;  %v1535_v56 = vld [vmem:[#allocation2 + $0x380] ss:$16 sps:$4 sm:$0xff]   ;;  %v1540_v58 = vld [vmem:[#allocation2 + $0x164] ss:$16 sps:$4 sm:$0xff]  }
  0x27   :  { %1056 = vmatprep.subr.bf16.mxu1 %v1501_v31  ;;  %v1543_v59 = vld [vmem:[#allocation2 + $0x364] ss:$16 sps:$4 sm:$0xff]   ;;  %v1538_v60 = vld [vmem:[#allocation2 + $0x160] ss:$16 sps:$4 sm:$0xff]  }
  0x28   :  { %v1541_v61 = vld [vmem:[#allocation2 + $0x360] ss:$16 sps:$4 sm:$0xff]   ;;  %v1546_v62 = vld [vmem:[#allocation2 + $0x144] ss:$16 sps:$4 sm:$0xff]  }
  0x29   :  { %1016 = vmatpush1.bf16.msra.mxu0 %v1496_v32  ;;  %v1549_v63 = vld [vmem:[#allocation2 + $0x344] ss:$16 sps:$4 sm:$0xff]   ;;  %v1544_v0 = vld [vmem:[#allocation2 + $0x140] ss:$16 sps:$4 sm:$0xff]  }
  0x2a   :  { %1057 = vmatpush1.bf16.msra.mxu1 %v1499_v33  ;;  %1017 = vmatprep.subr.bf16.mxu0 %v1504_v34  ;;  %v1547_v1 = vld [vmem:[#allocation2 + $0x340] ss:$16 sps:$4 sm:$0xff]   ;;  %v1552_v2 = vld [vmem:[#allocation2 + $0x124] ss:$16 sps:$4 sm:$0xff]  }
  0x2b   :  { %1058 = vmatprep.subr.bf16.mxu1 %v1507_v35  ;;  %v1555_v3 = vld [vmem:[#allocation2 + $0x324] ss:$16 sps:$4 sm:$0xff]   ;;  %v1550_v4 = vld [vmem:[#allocation2 + $0x120] ss:$16 sps:$4 sm:$0xff]  }
  0x2c   :  { %v1553_v5 = vld [vmem:[#allocation2 + $0x320] ss:$16 sps:$4 sm:$0xff]   ;;  %v1558_v6 = vld [vmem:[#allocation2 + $0x104] ss:$16 sps:$4 sm:$0xff]  }
  0x2d   :  { %1018 = vmatpush1.bf16.msra.mxu0 %v1502_v36  ;;  %v1561_v7 = vld [vmem:[#allocation2 + $0x304] ss:$16 sps:$4 sm:$0xff]   ;;  %v1556_v8 = vld [vmem:[#allocation2 + $0x100] ss:$16 sps:$4 sm:$0xff]  }
  0x2e   :  { %1059 = vmatpush1.bf16.msra.mxu1 %v1505_v37  ;;  %1019 = vmatprep.subr.bf16.mxu0 %v1510_v38  ;;  %v1559_v9 = vld [vmem:[#allocation2 + $0x300] ss:$16 sps:$4 sm:$0xff]  }
  0x2f   :  { %1060 = vmatprep.subr.bf16.mxu1 %v1513_v39  ;;  %v44_v16 = vld [vmem:[%s1815_s2] sm:$0xf] }
  0x30   :  { %v49_v19 = vrot.slane %v44_v16, %v48_v14  ;;  %v57_v20 = vrot.slane %v44_v16, %v56_v15  ;;  %v53_v21 = vrot.slane %v44_v16, %v52_v17  ;;  %v61_v22 = vrot.slane %v44_v16, %v60_v18  ;;  %v1570_v16 = vld [vmem:[#allocation2 + $0xcc] ss:$16 sps:$4 sm:$0xff]  }
  0x31   :  { %1020 = vmatpush1.bf16.msra.mxu0 %v1508_v40 }
  0x32   :  { %1061 = vmatpush1.bf16.msra.mxu1 %v1511_v41  ;;  %1021 = vmatprep.subr.bf16.mxu0 %v1516_v42 }
  0x33   :  { %1062 = vmatprep.subr.bf16.mxu1 %v1519_v43 }
  0x35   :  { %1022 = vmatpush2.bf16.msra.mxu0 %v1514_v44 }
  0x36   :  { %1063 = vmatpush2.bf16.msra.mxu1 %v1517_v45  ;;  %1023 = vmatprep.subr.bf16.mxu0 %v1522_v46 }
  0x37   :  { %1064 = vmatprep.subr.bf16.mxu1 %v1525_v47 }
  0x39   :  { %1024 = vmatpush2.bf16.msra.mxu0 %v1520_v48 }
  0x3a   :  { %1065 = vmatpush2.bf16.msra.mxu1 %v1523_v49  ;;  %1025 = vmatprep.subr.bf16.mxu0 %v1528_v50 }
  0x3b   :  { %1066 = vmatprep.subr.bf16.mxu1 %v1531_v51 }
  0x3d   :  { %1026 = vmatpush2.bf16.msra.mxu0 %v1526_v52 }
  0x3e   :  { %1067 = vmatpush2.bf16.msra.mxu1 %v1529_v53  ;;  %1027 = vmatprep.subr.bf16.mxu0 %v1534_v54 }
  0x3f   :  { %1068 = vmatprep.subr.bf16.mxu1 %v1537_v57 }
  0x41   :  { %1028 = vmatpush2.bf16.msra.mxu0 %v1532_v55 }
  0x42   :  { %1069 = vmatpush2.bf16.msra.mxu1 %v1535_v56  ;;  %1029 = vmatprep.subr.bf16.mxu0 %v1540_v58 }
  0x43   :  { %1070 = vmatprep.subr.bf16.mxu1 %v1543_v59 }
  0x45   :  { %1030 = vmatpush2.bf16.msra.mxu0 %v1538_v60 }
  0x46   :  { %1071 = vmatpush2.bf16.msra.mxu1 %v1541_v61  ;;  %1031 = vmatprep.subr.bf16.mxu0 %v1546_v62 }
  0x47   :  { %1072 = vmatprep.subr.bf16.mxu1 %v1549_v63 }
  0x49   :  { %1032 = vmatpush2.bf16.msra.mxu0 %v1544_v0 }
  0x4a   :  { %1073 = vmatpush2.bf16.msra.mxu1 %v1547_v1  ;;  %1033 = vmatprep.subr.bf16.mxu0 %v1552_v2 }
  0x4b   :  { %1074 = vmatprep.subr.bf16.mxu1 %v1555_v3 }
  0x4d   :  { %1034 = vmatpush2.bf16.msra.mxu0 %v1550_v4 }
  0x4e   :  { %1075 = vmatpush2.bf16.msra.mxu1 %v1553_v5  ;;  %1035 = vmatprep.subr.bf16.mxu0 %v1558_v6 }
  0x4f   :  { %1076 = vmatprep.subr.bf16.mxu1 %v1561_v7 }
  0x51   :  { %1036 = vmatpush2.bf16.msra.mxu0 %v1556_v8  ;;  %v1562_v8 = vld [vmem:[#allocation2 + $0xe8] ss:$16 sps:$4 sm:$0xff]  }
  0x52   :  { %1077 = vmatpush2.bf16.msra.mxu1 %v1559_v9  ;;  %1087 = vmatprep.subr.bf16.mxu0 %v1564_v10  ;;  %v1565_v10 = vld [vmem:[#allocation2 + $0x2e8] ss:$16 sps:$4 sm:$0xff]  }
  0x53   :  { %1128 = vmatprep.subr.bf16.mxu1 %v1567_v11 }
  0xd4   :  { %v127_v23 = vpop.f32.mrf.mxu0 }
  0xd5   :  { %v168_v24 = vpop.f32.mrf.mxu1  ;;  %v128_v25 = vadd.f32 %v127_v23, %v49_v19  ;;  %v1573_v19 = vld [vmem:[#allocation2 + $0x2cc] ss:$16 sps:$4 sm:$0xff]  }
  0xd6   :  { %v169_v26 = vadd.f32 %v168_v24, %v57_v20  ;;  %v129_v27 = vpop.f32.mrf.mxu0  ;;  %v1568_v20 = vld [vmem:[#allocation2 + $0xc8] ss:$16 sps:$4 sm:$0xff]   ;;  %v1579_v23 = vld [vmem:[#allocation2 + $0x2ac] ss:$16 sps:$4 sm:$0xff]  }
  0xd7   :  { %v170_v28 = vpop.f32.mrf.mxu1  ;;  %v179_v29 = vmul.f32 0.044715, %v128_v25  ;;  %v130_v31 = vadd.f32 %v129_v27, %v53_v21  ;;  %v175_v59 = vmul.f32 0.5, %v128_v25  ;;  %v1571_v21 = vld [vmem:[#allocation2 + $0x2c8] ss:$16 sps:$4 sm:$0xff]  }
  0xd8   :  { %v181_v30 = vmul.f32 0.044715, %v169_v26  ;;  %v171_v32 = vadd.f32 %v170_v28, %v61_v22  ;;  %v131_v33 = vpop.f32.mrf.mxu0  ;;  %v177_v0 = vmul.f32 0.5, %v169_v26  ;;  %v1576_v22 = vld [vmem:[#allocation2 + $0xac] ss:$16 sps:$4 sm:$0xff]  }
  0xd9   :  { %v172_v34 = vpop.f32.mrf.mxu1  ;;  %v183_v35 = vmul.f32 %v179_v29, %v128_v25  ;;  %v180_v37 = vmul.f32 0.044715, %v130_v31  ;;  %v176_v62 = vmul.f32 0.5, %v130_v31  ;;  %v1574_v24 = vld [vmem:[#allocation2 + $0xa8] ss:$16 sps:$4 sm:$0xff]  }
  0xda   :  { %v185_v36 = vmul.f32 %v181_v30, %v169_v26  ;;  %v182_v38 = vmul.f32 0.044715, %v171_v32  ;;  %v132_v39 = vpop.f32.mrf.mxu0  ;;  %v178_v1 = vmul.f32 0.5, %v171_v32  ;;  %v1585_v27 = vld [vmem:[#allocation2 + $0x28c] ss:$16 sps:$4 sm:$0xff]  }
  0xdb   :  { %v173_v40 = vpop.f32.mrf.mxu1  ;;  %v187_v41 = vmul.f32 %v183_v35, %v128_v25  ;;  %v184_v43 = vmul.f32 %v180_v37, %v130_v31  ;;  %v1580_v28 = vld [vmem:[#allocation2 + $0x88] ss:$16 sps:$4 sm:$0xff]   ;;  %v1588_v30 = vld [vmem:[#allocation2 + $0x6c] ss:$16 sps:$4 sm:$0xff]  }
  0xdc   :  { %v189_v42 = vmul.f32 %v185_v36, %v169_v26  ;;  %v186_v44 = vmul.f32 %v182_v38, %v171_v32  ;;  %v1583_v29 = vld [vmem:[#allocation2 + $0x288] ss:$16 sps:$4 sm:$0xff]   ;;  %v1594_v34 = vld [vmem:[#allocation2 + $0x4c] ss:$16 sps:$4 sm:$0xff]  }
  0xdd   :  { %v191_v45 = vadd.f32 %v187_v41, %v128_v25  ;;  %v188_v47 = vmul.f32 %v184_v43, %v130_v31  ;;  %v1577_v25 = vld [vmem:[#allocation2 + $0x2a8] ss:$16 sps:$4 sm:$0xff]   ;;  %v1597_v35 = vld [vmem:[#allocation2 + $0x24c] ss:$16 sps:$4 sm:$0xff]  }
  0xde   :  { %v193_v46 = vadd.f32 %v189_v42, %v169_v26  ;;  %v190_v48 = vmul.f32 %v186_v44, %v171_v32  ;;  %v1582_v26 = vld [vmem:[#allocation2 + $0x8c] ss:$16 sps:$4 sm:$0xff]   ;;  %v1589_v33 = vld [vmem:[#allocation2 + $0x268] ss:$16 sps:$4 sm:$0xff]  }
  0xdf   :  { %v195_v49 = vmul.f32 0.7978846, %v191_v45  ;;  %v192_v51 = vadd.f32 %v188_v47, %v130_v31  ;;  %v1591_v31 = vld [vmem:[#allocation2 + $0x26c] ss:$16 sps:$4 sm:$0xff]   ;;  %v1592_v36 = vld [vmem:[#allocation2 + $0x48] ss:$16 sps:$4 sm:$0xff]  }
  0xe0   :  { %v197_v50 = vmul.f32 0.7978846, %v193_v46  ;;  %v194_v52 = vadd.f32 %v190_v48, %v171_v32  ;;  %v1586_v32 = vld [vmem:[#allocation2 + $0x68] ss:$16 sps:$4 sm:$0xff]   ;;  %v1600_v38 = vld [vmem:[#allocation2 + $0x2c] ss:$16 sps:$4 sm:$0xff]  }
  0xe1   :  { %v196_v53 = vmul.f32 0.7978846, %v192_v51  ;;  %1662 = vtanh.f32 %v195_v49  ;;  %v1595_v37 = vld [vmem:[#allocation2 + $0x248] ss:$16 sps:$4 sm:$0xff]   ;;  %v1603_v39 = vld [vmem:[#allocation2 + $0x22c] ss:$16 sps:$4 sm:$0xff]  }
  0xe2   :  { %v198_v54 = vmul.f32 0.7978846, %v194_v52  ;;  %1664 = vtanh.f32 %v197_v50  ;;  %v1598_v40 = vld [vmem:[#allocation2 + $0x28] ss:$16 sps:$4 sm:$0xff]   ;;  %v1606_v42 = vld [vmem:[#allocation2 + $0xc] ss:$16 sps:$4 sm:$0xff]  }
  0xe3   :  { %1666 = vtanh.f32 %v196_v53  ;;  %v1601_v41 = vld [vmem:[#allocation2 + $0x228] ss:$16 sps:$4 sm:$0xff]   ;;  %v1609_v43 = vld [vmem:[#allocation2 + $0x20c] ss:$16 sps:$4 sm:$0xff]  }
  0xe4   :  { %1668 = vtanh.f32 %v198_v54  ;;  %v1604_v44 = vld [vmem:[#allocation2 + $0x8] ss:$16 sps:$4 sm:$0xff]   ;;  %v1612_v46 = vld [vmem:[#allocation2 + $0x1ec] ss:$16 sps:$4 sm:$0xff]  }
  0xe5   :  { %v1607_v45 = vld [vmem:[#allocation2 + $0x208] ss:$16 sps:$4 sm:$0xff]   ;;  %v1615_v47 = vld [vmem:[#allocation2 + $0x3ec] ss:$16 sps:$4 sm:$0xff]  }
  0xe6   :  { %v1610_v48 = vld [vmem:[#allocation2 + $0x1e8] ss:$16 sps:$4 sm:$0xff]   ;;  %v1618_v50 = vld [vmem:[#allocation2 + $0x1cc] ss:$16 sps:$4 sm:$0xff]  }
  0xe7   :  { %v1613_v49 = vld [vmem:[#allocation2 + $0x3e8] ss:$16 sps:$4 sm:$0xff]   ;;  %v1621_v51 = vld [vmem:[#allocation2 + $0x3cc] ss:$16 sps:$4 sm:$0xff]  }
  0xe8   :  { %v1616_v52 = vld [vmem:[#allocation2 + $0x1c8] ss:$16 sps:$4 sm:$0xff]   ;;  %v1624_v54 = vld [vmem:[#allocation2 + $0x1ac] ss:$16 sps:$4 sm:$0xff]  }
  0xe9   :  { %v1619_v53 = vld [vmem:[#allocation2 + $0x3c8] ss:$16 sps:$4 sm:$0xff]  }
  0xee   :  { %v1663_v55 = vpop.eup %1662 }
  0xef   :  { %v1665_v56 = vpop.eup %1664  ;;  %v203_v57 = vadd.f32 1.0, %v1663_v55  ;;  %v1627_v55 = vld [vmem:[#allocation2 + $0x3ac] ss:$16 sps:$4 sm:$0xff]  }
  0xf0   :  { %v1667_v58 = vpop.eup %1666  ;;  %v205_v60 = vadd.f32 1.0, %v1665_v56  ;;  %v1622_v56 = vld [vmem:[#allocation2 + $0x1a8] ss:$16 sps:$4 sm:$0xff]  }
  0xf1   :  { %v1669_v61 = vpop.eup %1668  ;;  %v204_v63 = vadd.f32 1.0, %v1667_v58  ;;  %v207_v3 = vmul.f32 %v203_v57, %v175_v59  ;;  %v1625_v57 = vld [vmem:[#allocation2 + $0x3a8] ss:$16 sps:$4 sm:$0xff]   ;;  %v1630_v58 = vld [vmem:[#allocation2 + $0x18c] ss:$16 sps:$4 sm:$0xff]  }
  0xf2   :  { %v206_v2 = vadd.f32 1.0, %v1669_v61  ;;  %v209_v5 = vmul.f32 %v205_v60, %v177_v0  ;;  %v1633_v59 = vld [vmem:[#allocation2 + $0x38c] ss:$16 sps:$4 sm:$0xff]   ;;  %v1628_v60 = vld [vmem:[#allocation2 + $0x188] ss:$16 sps:$4 sm:$0xff]  }
  0xf3   :  { %v208_v4 = vmul.f32 %v204_v63, %v176_v62  ;;  %v1775_v11 = vpack.c.bf16 %v207_v3, %v207_v3  ;;  %v1631_v61 = vld [vmem:[#allocation2 + $0x388] ss:$16 sps:$4 sm:$0xff]   ;;  %v1636_v62 = vld [vmem:[#allocation2 + $0x16c] ss:$16 sps:$4 sm:$0xff]  }
  0xf4   :  { %v210_v6 = vmul.f32 %v206_v2, %v178_v1  ;;  %v1777_v12 = vpack.c.bf16 %v209_v5, %v209_v5  ;;  %v1639_v63 = vld [vmem:[#allocation2 + $0x36c] ss:$16 sps:$4 sm:$0xff]   ;;  %v1634_v0 = vld [vmem:[#allocation2 + $0x168] ss:$16 sps:$4 sm:$0xff]  }
  0xf5   :  { %v212_v7 = vpack.c.bf16 %v208_v4, %v208_v4  ;;  %v1637_v1 = vld [vmem:[#allocation2 + $0x368] ss:$16 sps:$4 sm:$0xff]   ;;  %v1642_v2 = vld [vmem:[#allocation2 + $0x14c] ss:$16 sps:$4 sm:$0xff]  }
  0xf6   :  { %v214_v9 = vpack.c.bf16 %v210_v6, %v210_v6  ;;  %v1645_v3 = vld [vmem:[#allocation2 + $0x34c] ss:$16 sps:$4 sm:$0xff]   ;;  %v1640_v4 = vld [vmem:[#allocation2 + $0x148] ss:$16 sps:$4 sm:$0xff]  }
  0xf7   :  { %1037 = vmatprep.mubr.bf16.mxu0 %v212_v7  ;;  %v1643_v5 = vld [vmem:[#allocation2 + $0x348] ss:$16 sps:$4 sm:$0xff]   ;;  %v1648_v6 = vld [vmem:[#allocation2 + $0x12c] ss:$16 sps:$4 sm:$0xff]  }
  0xf8   :  { %1078 = vmatprep.mubr.bf16.mxu1 %v214_v9  ;;  %1038 = vmatmul.mubr.bf16.vlgmr.msra.gmra.mxu0 %v1775_v11 }
  0xf9   :  { %1079 = vmatmul.mubr.bf16.vlgmr.msra.gmra.mxu1 %v1777_v12  ;;  %1088 = vmatpush1.bf16.msra.mxu0 %v1562_v8  ;;  %v1646_v8 = vld [vmem:[#allocation2 + $0x128] ss:$16 sps:$4 sm:$0xff]  }
  0xfa   :  { %1129 = vmatpush1.bf16.msra.mxu1 %v1565_v10  ;;  %1119 = vmatprep.mubr.bf16.mxu0 %v212_v7  ;;  %v1651_v7 = vld [vmem:[#allocation2 + $0x32c] ss:$16 sps:$4 sm:$0xff]  }
  0xfb   :  { %1160 = vmatprep.mubr.bf16.mxu1 %v214_v9  ;;  %1089 = vmatprep.subr.bf16.mxu0 %v1570_v16  ;;  %v1649_v9 = vld [vmem:[#allocation2 + $0x328] ss:$16 sps:$4 sm:$0xff]   ;;  %v1654_v10 = vld [vmem:[#allocation2 + $0x10c] ss:$16 sps:$4 sm:$0xff]  }
  0xfc   :  { %1130 = vmatprep.subr.bf16.mxu1 %v1573_v19  ;;  %v1657_v16 = vld [vmem:[#allocation2 + $0x30c] ss:$16 sps:$4 sm:$0xff]   ;;  %v1652_v19 = vld [vmem:[#allocation2 + $0x108] ss:$16 sps:$4 sm:$0xff]  }
  0xfd   :  { %1090 = vmatpush1.bf16.msra.mxu0 %v1568_v20  ;;  %v1655_v20 = vld [vmem:[#allocation2 + $0x308] ss:$16 sps:$4 sm:$0xff]  }
  0xfe   :  { %1131 = vmatpush1.bf16.msra.mxu1 %v1571_v21  ;;  %1091 = vmatprep.subr.bf16.mxu0 %v1576_v22  ;;  %v1205_v21 = vld [vmem:[%s1818_s5] sm:$0xff] }
  0xff   :  { %1132 = vmatprep.subr.bf16.mxu1 %v1579_v23  ;;  %v1454_v22 = vcombine.high %v1205_v21, %v1205_v21  ;;  %v1789_v23 = vld [vmem:[%s1818_s5 + $0x8] sm:$0xff] }
 0x101   :  { %1092 = vmatpush1.bf16.msra.mxu0 %v1574_v24  ;;  %v1456_v24 = vcombine.high %v1789_v23, %v1789_v23 }
 0x102   :  { %1133 = vmatpush1.bf16.msra.mxu1 %v1577_v25  ;;  %1093 = vmatprep.subr.bf16.mxu0 %v1582_v26 }
 0x103   :  { %1134 = vmatprep.subr.bf16.mxu1 %v1585_v27 }
 0x105   :  { %1094 = vmatpush1.bf16.msra.mxu0 %v1580_v28 }
 0x106   :  { %1135 = vmatpush1.bf16.msra.mxu1 %v1583_v29  ;;  %1095 = vmatprep.subr.bf16.mxu0 %v1588_v30 }
 0x107   :  { %1136 = vmatprep.subr.bf16.mxu1 %v1591_v31 }
 0x109   :  { %1096 = vmatpush1.bf16.msra.mxu0 %v1586_v32 }
 0x10a   :  { %1137 = vmatpush1.bf16.msra.mxu1 %v1589_v33  ;;  %1097 = vmatprep.subr.bf16.mxu0 %v1594_v34 }
 0x10b   :  { %1138 = vmatprep.subr.bf16.mxu1 %v1597_v35 }
 0x10d   :  { %1098 = vmatpush1.bf16.msra.mxu0 %v1592_v36 }
 0x10e   :  { %1139 = vmatpush1.bf16.msra.mxu1 %v1595_v37  ;;  %1099 = vmatprep.subr.bf16.mxu0 %v1600_v38 }
 0x10f   :  { %1140 = vmatprep.subr.bf16.mxu1 %v1603_v39 }
 0x111   :  { %1100 = vmatpush1.bf16.msra.mxu0 %v1598_v40 }
 0x112   :  { %1141 = vmatpush1.bf16.msra.mxu1 %v1601_v41  ;;  %1101 = vmatprep.subr.bf16.mxu0 %v1606_v42 }
 0x113   :  { %1142 = vmatprep.subr.bf16.mxu1 %v1609_v43 }
 0x115   :  { %1102 = vmatpush1.bf16.msra.mxu0 %v1604_v44 }
 0x116   :  { %1143 = vmatpush1.bf16.msra.mxu1 %v1607_v45  ;;  %1103 = vmatprep.subr.bf16.mxu0 %v1612_v46 }
 0x117   :  { %1144 = vmatprep.subr.bf16.mxu1 %v1615_v47 }
 0x119   :  { %1104 = vmatpush2.bf16.msra.mxu0 %v1610_v48 }
 0x11a   :  { %1145 = vmatpush2.bf16.msra.mxu1 %v1613_v49  ;;  %1105 = vmatprep.subr.bf16.mxu0 %v1618_v50 }
 0x11b   :  { %1146 = vmatprep.subr.bf16.mxu1 %v1621_v51 }
 0x11d   :  { %1106 = vmatpush2.bf16.msra.mxu0 %v1616_v52 }
 0x11e   :  { %1147 = vmatpush2.bf16.msra.mxu1 %v1619_v53  ;;  %1107 = vmatprep.subr.bf16.mxu0 %v1624_v54 }
 0x11f   :  { %1148 = vmatprep.subr.bf16.mxu1 %v1627_v55 }
 0x121   :  { %1108 = vmatpush2.bf16.msra.mxu0 %v1622_v56 }
 0x122   :  { %1149 = vmatpush2.bf16.msra.mxu1 %v1625_v57  ;;  %1109 = vmatprep.subr.bf16.mxu0 %v1630_v58  ;;  %v1453_v57 = vcombine.low %v1205_v21, %v1205_v21 }
 0x123   :  { %1150 = vmatprep.subr.bf16.mxu1 %v1633_v59 }
 0x125   :  { %1110 = vmatpush2.bf16.msra.mxu0 %v1628_v60 }
 0x126   :  { %1151 = vmatpush2.bf16.msra.mxu1 %v1631_v61  ;;  %1111 = vmatprep.subr.bf16.mxu0 %v1636_v62 }
 0x127   :  { %1152 = vmatprep.subr.bf16.mxu1 %v1639_v63 }
 0x129   :  { %1112 = vmatpush2.bf16.msra.mxu0 %v1634_v0 }
 0x12a   :  { %1153 = vmatpush2.bf16.msra.mxu1 %v1637_v1  ;;  %1113 = vmatprep.subr.bf16.mxu0 %v1642_v2 }
 0x12b   :  { %1154 = vmatprep.subr.bf16.mxu1 %v1645_v3 }
 0x12d   :  { %1114 = vmatpush2.bf16.msra.mxu0 %v1640_v4 }
 0x12e   :  { %1155 = vmatpush2.bf16.msra.mxu1 %v1643_v5  ;;  %1115 = vmatprep.subr.bf16.mxu0 %v1648_v6 }
 0x12f   :  { %1156 = vmatprep.subr.bf16.mxu1 %v1651_v7 }
 0x131   :  { %1116 = vmatpush2.bf16.msra.mxu0 %v1646_v8 }
 0x132   :  { %1157 = vmatpush2.bf16.msra.mxu1 %v1649_v9  ;;  %1117 = vmatprep.subr.bf16.mxu0 %v1654_v10 }
 0x133   :  { %1158 = vmatprep.subr.bf16.mxu1 %v1657_v16 }
 0x135   :  { %1118 = vmatpush2.bf16.msra.mxu0 %v1652_v19 }
 0x136   :  { %1159 = vmatpush2.bf16.msra.mxu1 %v1655_v20 }
 0x138   :  { %1120 = vmatmul.mubr.bf16.vlgmr.msra.gmra.mxu0 %v1775_v11  ;;  %v1211_v11 = vld [vmem:[%s1819_s6] sm:$0xff] }
 0x139   :  { %1161 = vmatmul.mubr.bf16.vlgmr.msra.gmra.mxu1 %v1777_v12  ;;  %1263 = vmatprep.mubr.bf16.mxu0 %v1454_v22  ;;  %v343_v12 = vld [vmem:[%s1817_s4] sm:$0xf] }
 0x13a   :  { %1303 = vmatprep.mubr.bf16.mxu1 %v1456_v24  ;;  %1214 = vperm.xlu0 %1461, %v1211_v11   ;;  %v348_v25 = vrot.slane %v343_v12, %v48_v14  ;;  %v352_v26 = vrot.slane %v343_v12, %v52_v17  ;;  %v356_v58 = vrot.slane %v343_v12, %v56_v15 }
 0x13b   :  { %v360_v59 = vrot.slane %v343_v12, %v60_v18 }
 0x1b8   :  { %v1039_v27 = vpop.f32.mrf.mxu0 }
 0x1b9   :  { %v1040_v28 = vadd.f32 %v1039_v27, %v348_v25  ;;  %v1080_v29 = vpop.f32.mrf.mxu1 }
 0x1ba   :  { %v1041_v30 = vpop.f32.mrf.mxu0 }
 0x1bb   :  { %v1081_v31 = vadd.f32 %v1080_v29, %v1040_v28  ;;  %v1042_v32 = vadd.f32 %v1041_v30, %v352_v26  ;;  %v1082_v33 = vpop.f32.mrf.mxu1 }
 0x1bc   :  { %v1043_v34 = vpop.f32.mrf.mxu0 }
 0x1bd   :  { %v1173_v35 = vmul.f32 0.044715, %v1081_v31  ;;  %v1083_v36 = vadd.f32 %v1082_v33, %v1042_v32  ;;  %v1084_v37 = vpop.f32.mrf.mxu1  ;;  %v1169_v50 = vmul.f32 0.5, %v1081_v31 }
 0x1be   :  { %v1044_v38 = vpop.f32.mrf.mxu0 }
 0x1bf   :  { %v1177_v39 = vmul.f32 %v1173_v35, %v1081_v31  ;;  %v1174_v40 = vmul.f32 0.044715, %v1083_v36  ;;  %v1085_v41 = vpop.f32.mrf.mxu1  ;;  %v1170_v51 = vmul.f32 0.5, %v1083_v36 }
 0x1c1   :  { %v1181_v42 = vmul.f32 %v1177_v39, %v1081_v31  ;;  %v1178_v14 = vmul.f32 %v1174_v40, %v1083_v36 }
 0x1c3   :  { %v1185_v43 = vadd.f32 %v1181_v42, %v1081_v31  ;;  %v1182_v44 = vmul.f32 %v1178_v14, %v1083_v36  ;;  %v1455_v31 = vcombine.low %v1789_v23, %v1789_v23 }
 0x1c5   :  { %v1189_v17 = vmul.f32 0.7978846, %v1185_v43  ;;  %v1186_v45 = vadd.f32 %v1182_v44, %v1083_v36  ;;  %v1215_v36 = vpop.permute.xlu0 %1214 }
 0x1c7   :  { %v1190_v46 = vmul.f32 0.7978846, %v1186_v45  ;;  %1670 = vtanh.f32 %v1189_v17 }
 0x1c9   :  { %1672 = vtanh.f32 %v1190_v46 }
 0x1d4   :  { %v1671_v47 = vpop.eup %1670 }
 0x1d5   :  { %v1197_v48 = vadd.f32 1.0, %v1671_v47 }
 0x1d6   :  { %v1673_v49 = vpop.eup %1672 }
 0x1d7   :  { %v1198_v52 = vadd.f32 1.0, %v1673_v49  ;;  %v1201_v53 = vmul.f32 %v1197_v48, %v1169_v50 }
 0x1d9   :  { %v1202_v54 = vmul.f32 %v1198_v52, %v1170_v51  ;;  %v1207_v56 = vpack.c.bf16 %v1201_v53, %v1201_v53 }
 0x1db   :  { %v1208_v55 = vpack.c.bf16 %v1202_v54, %v1202_v54 }
 0x1dd   :  { %1245 = vmatprep.subr.bf16.mxu0 %v1208_v55 }
 0x1de   :  { %1246 = vmatpush1.bf16.xpose.msra.mxu0 %v1207_v56 }
 0x1e5   :  { %1264 = vmatmul.mubr.bf16.vlgmr.msra.gmra.mxu0 %v1453_v57 }
 0x1f8   :  { %v1121_v60 = vpop.f32.mrf.mxu0 }
 0x1f9   :  { %v1122_v61 = vadd.f32 %v1121_v60, %v356_v58  ;;  %v1162_v62 = vpop.f32.mrf.mxu1 }
 0x1fa   :  { %v1123_v63 = vpop.f32.mrf.mxu0 }
 0x1fb   :  { %v1163_v0 = vadd.f32 %v1162_v62, %v1122_v61  ;;  %v1124_v1 = vadd.f32 %v1123_v63, %v360_v59  ;;  %v1164_v2 = vpop.f32.mrf.mxu1 }
 0x1fc   :  { %v1125_v3 = vpop.f32.mrf.mxu0 }
 0x1fd   :  { %v1175_v4 = vmul.f32 0.044715, %v1163_v0  ;;  %v1165_v5 = vadd.f32 %v1164_v2, %v1124_v1  ;;  %v1166_v6 = vpop.f32.mrf.mxu1  ;;  %v1171_v12 = vmul.f32 0.5, %v1163_v0 }
 0x1fe   :  { %v1126_v7 = vpop.f32.mrf.mxu0 }
 0x1ff   :  { %v1179_v8 = vmul.f32 %v1175_v4, %v1163_v0  ;;  %v1176_v9 = vmul.f32 0.044715, %v1165_v5  ;;  %v1167_v10 = vpop.f32.mrf.mxu1  ;;  %v1172_v25 = vmul.f32 0.5, %v1165_v5 }
 0x201   :  { %v1183_v16 = vmul.f32 %v1179_v8, %v1163_v0  ;;  %v1180_v15 = vmul.f32 %v1176_v9, %v1165_v5 }
 0x203   :  { %v1187_v19 = vadd.f32 %v1183_v16, %v1163_v0  ;;  %v1184_v13 = vmul.f32 %v1180_v15, %v1165_v5 }
 0x205   :  { %v1191_v18 = vmul.f32 0.7978846, %v1187_v19  ;;  %v1188_v20 = vadd.f32 %v1184_v13, %v1165_v5 }
 0x207   :  { %v1192_v21 = vmul.f32 0.7978846, %v1188_v20  ;;  %1674 = vtanh.f32 %v1191_v18 }
 0x209   :  { %1676 = vtanh.f32 %v1192_v21 }
 0x214   :  { %v1675_v22 = vpop.eup %1674 }
 0x215   :  { %v1199_v24 = vadd.f32 1.0, %v1675_v22 }
 0x216   :  { %v1677_v11 = vpop.eup %1676 }
 0x217   :  { %v1200_v26 = vadd.f32 1.0, %v1677_v11  ;;  %v1203_v27 = vmul.f32 %v1199_v24, %v1171_v12 }
 0x219   :  { %v1204_v28 = vmul.f32 %v1200_v26, %v1172_v25  ;;  %v1209_v30 = vpack.c.bf16 %v1203_v27, %v1203_v27 }
 0x21b   :  { %v1210_v29 = vpack.c.bf16 %v1204_v28, %v1204_v28 }
 0x21d   :  { %1285 = vmatprep.subr.bf16.mxu1 %v1210_v29 }
 0x21e   :  { %1286 = vmatpush1.bf16.xpose.msra.mxu1 %v1209_v30 }
 0x225   :  { %1304 = vmatmul.mubr.bf16.vlgmr.msra.gmra.mxu1 %v1455_v31 }
 0x2a5   :  { %v1265_v32 = vpop.f32.mrf.mxu0 }
 0x2a6   :  { %v1266_v37 = vadd.f32 %v1265_v32, %v1215_v36 }
 0x2a7   :  { %v1267_v33 = vpop.f32.mrf.mxu0 }
 0x2a9   :  { %v1268_v34 = vpop.f32.mrf.mxu0 }
 0x2ab   :  { %v1269_v35 = vpop.f32.mrf.mxu0 }
 0x2e5   :  { %v1305_v38 = vpop.f32.mrf.mxu1 }
 0x2e6   :  { %v1306_v39 = vadd.f32 %v1305_v38, %v1266_v37 }
 0x2e7   :  { %v1307_v40 = vpop.f32.mrf.mxu1 }
 0x2e8   :  { %1311 = vst.msk [vmem:[%s1820_s7] sm:$0xff] %vm76_vm1, %v1306_v39 }
 0x2e9   :  { %v1308_v41 = vpop.f32.mrf.mxu1 }
 0x2eb   :  { %v1309_v42 = vpop.f32.mrf.mxu1 }
 0x2ec   :  { %1316 = vsyncpa [#allocation3], 1 }

</bundles_post_ra>
